<compile_context>
chip_gen: v7x
topology: tpu7x:2x2x1
jax: 0.10.0
libtpu: 0.0.40
codegen_flags: <defaults>
</compile_context>

<pallas_src>
import functools

import jax
import jax.numpy as jnp
from jax.experimental import pallas as pl
from jax.experimental.pallas import tpu as pltpu

BN_EPS = 1e-5
LEAKY_SLOPE = 0.1

_VMEM_LIMIT_BYTES = 48 * 1024 * 1024   # safe on v5e/v6e (128 MiB) and v7x (64 MiB)
_FUSED_VMEM_BUDGET = 40 * 1024 * 1024  # eligibility budget for the fused path


def _round_up(n, m):
    return ((n + m - 1) // m) * m


def _cdiv(a, b):
    return -(-a // b)


def _choose_batch_tiling(batch, block_b):
    """Batch tile: multiple of 16 (bf16 sublane packing); batch padded up to tile*nbt."""
    nbt = max(1, _cdiv(batch, max(block_b, 16)))
    tb = _round_up(_cdiv(batch, nbt), 16)
    return tb, nbt, tb * nbt


def _class_padding(class_num):
    """Lane padding for the classifier output; tile the class axis when it is huge."""
    if class_num <= 2048:
        c_pad = _round_up(class_num, 256)   # full MXU columns on v6e/v7x
        return c_pad, c_pad
    tc = 2048
    return _round_up(class_num, tc), tc


# ----------------------------- fused kernel ------------------------------------------
# grid = (2, nbt).  Pass 0: bottleneck matmul into a VMEM bf16 scratch + batch stats.
# Pass 1: fold BN once into scale/shift, LeakyReLU, classifier matmul.
def _fused_kernel(x_ref, w1_ref, gamma_ref, beta_ref, w2_ref, b2_ref, out_ref,
                  h_scr, sum_ref, sq_ref, scale_ref, shift_ref, *, inv_b):
    p = pl.program_id(0)   # pass
    i = pl.program_id(1)   # batch tile

    @pl.when(jnp.logical_and(p == 0, i == 0))
    def _init():
        sum_ref[...] = jnp.zeros_like(sum_ref)
        sq_ref[...] = jnp.zeros_like(sq_ref)

    @pl.when(p == 0)
    def _pass0():
        h = jnp.dot(x_ref[...], w1_ref[...],
                    preferred_element_type=jnp.float32)          # (tb, NB) f32
        h_scr[i] = h.astype(jnp.bfloat16)                        # keep hidden in VMEM
        sum_ref[...] += jnp.sum(h, axis=0, keepdims=True)
        sq_ref[...] += jnp.sum(h * h, axis=0, keepdims=True)

    @pl.when(jnp.logical_and(p == 1, i == 0))
    def _fold_bn():
        mean = sum_ref[...] * inv_b
        var = jnp.maximum(sq_ref[...] * inv_b - mean * mean, 0.0)  # clamp cancellation
        scale = gamma_ref[...] * jax.lax.rsqrt(var + BN_EPS)
        scale_ref[...] = scale
        shift_ref[...] = beta_ref[...] - mean * scale

    @pl.when(p == 1)
    def _pass1():
        y = h_scr[i].astype(jnp.float32) * scale_ref[...] + shift_ref[...]
        y = jnp.where(y >= 0, y, LEAKY_SLOPE * y)                 # LeakyReLU(0.1)
        out = jnp.dot(y.astype(jnp.bfloat16), w2_ref[...],
                      preferred_element_type=jnp.float32)
        out_ref[...] = out + b2_ref[...]                          # (tb, C_pad) f32


# ----------------------------- fallback: stage 1 --------------------------------------
# Per batch tile: h = x_tile @ W1 (bf16 in, f32 acc) stored bf16, plus per-tile partial
# sum / sum-of-squares (no grid-carried accumulator -> "parallel" axis, v7x megacore).
def _stage1_kernel(x_ref, w1_ref, h_ref, psum_ref, psq_ref):
    h = jnp.dot(x_ref[...], w1_ref[...], preferred_element_type=jnp.float32)
    h_ref[...] = h.astype(jnp.bfloat16)
    psum_ref[...] = jnp.sum(h, axis=0, keepdims=True)[None, :, :]       # (1, 1, NB)
    psq_ref[...] = jnp.sum(h * h, axis=0, keepdims=True)[None, :, :]    # (1, 1, NB)


# ----------------------------- fallback: stage 2 --------------------------------------
# BN already folded into scale/shift in the wrapper; LeakyReLU + classifier matmul.
def _stage2_kernel(h_ref, scale_ref, shift_ref, w2_ref, b2_ref, out_ref):
    y = h_ref[...].astype(jnp.float32) * scale_ref[...] + shift_ref[...]
    y = jnp.where(y >= 0, y, LEAKY_SLOPE * y)
    out_ref[...] = jnp.dot(y.astype(jnp.bfloat16), w2_ref[...],
                           preferred_element_type=jnp.float32) + b2_ref[...]


def _fused_vmem_bytes(tb, b_pad, d, nb, c_pad):
    """Rough VMEM footprint of the fused kernel (double-buffered BlockSpec operands)."""
    return (2 * tb * d * 2            # x tile, bf16
            + 2 * d * nb * 2          # W1, bf16
            + 2 * nb * c_pad * 2      # W2, bf16
            + 2 * (2 * nb + c_pad) * 4  # gamma, beta, b2, f32
            + 2 * tb * c_pad * 4      # out tile, f32
            + b_pad * nb * 2          # h scratch, bf16
            + 4 * nb * 4)             # sum / sq / scale / shift scratch, f32


def class_block_forward(x, w1_t, gamma, beta, w2_t, b2, *, block_b=512,
                        force_two_stage=False):
    B, D = x.shape
    NB = w1_t.shape[1]
    C = w2_t.shape[1]
    C_pad, tc = _class_padding(C)

    tb, nbt, B_pad = _choose_batch_tiling(B, block_b)

    # Pad batch rows (exact zeros; with b1 folded away they contribute 0 to the stats).
    if B_pad != B:
        x = jnp.pad(x, ((0, B_pad - B), (0, 0)))
    # Pad the classifier to a lane-dense output; padded columns are exact zeros.
    if C_pad != C:
        w2_t = jnp.pad(w2_t, ((0, 0), (0, C_pad - C)))
        b2 = jnp.pad(b2, ((0, 0), (0, C_pad - C)))

    # bf16 matmul inputs, f32 accumulation (BN statistics stay f32).
    x_bf = x.astype(jnp.bfloat16)
    w1_bf = w1_t.astype(jnp.bfloat16)
    w2_bf = w2_t.astype(jnp.bfloat16)

    inv_b = 1.0 / B   # real batch size: padded zero rows do not count

    use_fused = (not force_two_stage) and (
        _fused_vmem_bytes(tb, B_pad, D, NB, C_pad) <= _FUSED_VMEM_BUDGET)

    if use_fused:
        # ---- single fused call: hidden activations never leave VMEM -----------------
        kernel = functools.partial(_fused_kernel, inv_b=inv_b)
        out_pad = pl.pallas_call(
            kernel,
            out_shape=jax.ShapeDtypeStruct((B_pad, C_pad), jnp.float32),
            grid=(2, nbt),
            in_specs=[
                pl.BlockSpec((tb, D), lambda p, i: (i * (1 - p), 0)),   # x (pass 0 only)
                pl.BlockSpec((D, NB), lambda p, i: (0, 0)),             # W1 resident
                pl.BlockSpec((1, NB), lambda p, i: (0, 0)),             # gamma
                pl.BlockSpec((1, NB), lambda p, i: (0, 0)),             # beta
                pl.BlockSpec((NB, C_pad), lambda p, i: (0, 0)),         # W2 resident
                pl.BlockSpec((1, C_pad), lambda p, i: (0, 0)),          # b2
            ],
            out_specs=pl.BlockSpec((tb, C_pad), lambda p, i: (i * p, 0)),
            scratch_shapes=[
                pltpu.VMEM((nbt, tb, NB), jnp.bfloat16),   # hidden activations
                pltpu.VMEM((1, NB), jnp.float32),          # sum over batch
                pltpu.VMEM((1, NB), jnp.float32),          # sum of squares
                pltpu.VMEM((1, NB), jnp.float32),          # folded scale
                pltpu.VMEM((1, NB), jnp.float32),          # folded shift
            ],
            compiler_params=pltpu.CompilerParams(
                dimension_semantics=("arbitrary", "arbitrary"),
                vmem_limit_bytes=_VMEM_LIMIT_BYTES),
        )(x_bf, w1_bf, gamma, beta, w2_bf, b2)
        return out_pad[:B, :C]

    # ---- fallback stage 1: bottleneck matmul (bf16 h) + per-tile partial stats -------
    h, psum, psq = pl.pallas_call(
        _stage1_kernel,
        out_shape=(
            jax.ShapeDtypeStruct((B_pad, NB), jnp.bfloat16),   # pre-BN hidden (bf16)
            jax.ShapeDtypeStruct((nbt, 1, NB), jnp.float32),   # per-tile sums
            jax.ShapeDtypeStruct((nbt, 1, NB), jnp.float32),   # per-tile sum-of-squares
        ),
        grid=(nbt,),
        in_specs=[
            pl.BlockSpec((tb, D), lambda i: (i, 0)),           # x tile (pipelined)
            pl.BlockSpec((D, NB), lambda i: (0, 0)),           # W1 resident
        ],
        out_specs=(
            pl.BlockSpec((tb, NB), lambda i: (i, 0)),
            pl.BlockSpec((1, 1, NB), lambda i: (i, 0, 0)),
            pl.BlockSpec((1, 1, NB), lambda i: (i, 0, 0)),
        ),
        compiler_params=pltpu.CompilerParams(
            dimension_semantics=("parallel",),                 # no grid-carried state
            vmem_limit_bytes=_VMEM_LIMIT_BYTES),
    )(x_bf, w1_bf)

    # Fold BN once in XLA (tiny (1, NB) ops): scale/shift only go into stage 2.
    s = jnp.sum(psum, axis=0)                                  # (1, NB)
    sq = jnp.sum(psq, axis=0)                                  # (1, NB)
    mean = s * inv_b
    var = jnp.maximum(sq * inv_b - mean * mean, 0.0)           # biased var, clamped
    scale = gamma * jax.lax.rsqrt(var + BN_EPS)
    shift = beta - mean * scale

    # ---- fallback stage 2: folded BN + LeakyReLU + classifier (class-tiled) ----------
    out_pad = pl.pallas_call(
        _stage2_kernel,
        out_shape=jax.ShapeDtypeStruct((B_pad, C_pad), jnp.float32),
        grid=(nbt, C_pad // tc),
        in_specs=[
            pl.BlockSpec((tb, NB), lambda i, j: (i, 0)),       # h tile (pipelined)
            pl.BlockSpec((1, NB), lambda i, j: (0, 0)),        # scale
            pl.BlockSpec((1, NB), lambda i, j: (0, 0)),        # shift
            pl.BlockSpec((NB, tc), lambda i, j: (0, j)),       # W2 (class-tiled)
            pl.BlockSpec((1, tc), lambda i, j: (0, j)),        # b2
        ],
        out_specs=pl.BlockSpec((tb, tc), lambda i, j: (i, j)),
        compiler_params=pltpu.CompilerParams(
            dimension_semantics=("parallel", "parallel"),      # shard across TCs
            vmem_limit_bytes=_VMEM_LIMIT_BYTES),
    )(h, scale, shift, w2_bf, b2)

    return out_pad[:B, :C]


def init_params(key, input_dim, num_bottleneck, class_num):
    k1, k2 = jax.random.split(key, 2)

    # nn.Linear(input_dim, num_bottleneck) + weights_init_kaiming:
    #   kaiming_normal_(a=0, mode='fan_out') -> std = sqrt(2 / out_features)
    std1 = (2.0 / num_bottleneck) ** 0.5
    w1 = std1 * jax.random.normal(k1, (num_bottleneck, input_dim), jnp.float32)
    # b1 is zero-init; with training-mode BatchNorm any per-feature constant added
    # before BN is exactly cancelled by the batch-mean subtraction -> omitted entirely.

    # BatchNorm1d affine params (kaiming init: weight=1, bias=0)
    gamma = jnp.ones((1, num_bottleneck), jnp.float32)
    beta = jnp.zeros((1, num_bottleneck), jnp.float32)

    # nn.Linear(num_bottleneck, class_num) + weights_init_classifier: std=0.001, bias=0
    w2 = 0.001 * jax.random.normal(k2, (class_num, num_bottleneck), jnp.float32)
    b2 = jnp.zeros((1, class_num), jnp.float32)

    # Pre-transpose weights to (in, out) for lane-dense matmuls in the kernels.
    return w1.T, gamma, beta, w2.T, b2


def _reference(x, w1_t, gamma, beta, w2_t, b2):
    """Pure-JAX reference with the same bf16-input / f32-accumulate matmuls."""
    h = jnp.dot(x.astype(jnp.bfloat16), w1_t.astype(jnp.bfloat16),
                preferred_element_type=jnp.float32)
    mean = jnp.mean(h, axis=0, keepdims=True)
    var = jnp.mean((h - mean) ** 2, axis=0, keepdims=True)       # biased variance
    y = gamma * (h - mean) * jax.lax.rsqrt(var + BN_EPS) + beta
    y = jnp.where(y >= 0, y, LEAKY_SLOPE * y)
    return jnp.dot(y.astype(jnp.bfloat16), w2_t.astype(jnp.bfloat16),
                   preferred_element_type=jnp.float32) + b2


if __name__ == "__main__":
    # Small shapes consistent with the module's forward: x (batch, input_dim) ->
    # logits (batch, class_num).  droprate = 0.0 -> no Dropout layer in add_block.
    # TODO(synk): droprate > 0 would need in-kernel dropout via pltpu.prng_random_bits.
    # TODO(synk): BN running_mean/running_var buffer updates are not emitted (forward
    #             only); batch sum / sum-of-squares are already computed if needed.
    B, INPUT_DIM, NUM_BOTTLENECK, CLASS_NUM = 8, 256, 128, 16

    key = jax.random.PRNGKey(0)
    kx, kp, kx2 = jax.random.split(key, 3)
    x = jax.random.normal(kx, (B, INPUT_DIM), jnp.float32)
    params = init_params(kp, INPUT_DIM, NUM_BOTTLENECK, CLASS_NUM)
    ref = _reference(x, *params)

    # Fused path (hidden activations kept in VMEM scratch).
    out = class_block_forward(x, *params)
    jax.block_until_ready(out)
    assert out.shape == (B, CLASS_NUM)
    assert bool(jnp.allclose(out, ref, atol=5e-3, rtol=5e-2)), \
        float(jnp.max(jnp.abs(out - ref)))

    # Two-stage fallback path (bf16 h through HBM, parallel per-tile stats).
    out2 = class_block_forward(x, *params, force_two_stage=True)
    jax.block_until_ready(out2)
    assert bool(jnp.allclose(out2, ref, atol=5e-3, rtol=5e-2)), \
        float(jnp.max(jnp.abs(out2 - ref)))

    # Multi-tile + batch-padding exercise (B not a multiple of the tile).
    B2 = 40
    x2 = jax.random.normal(kx2, (B2, INPUT_DIM), jnp.float32)
    ref2 = _reference(x2, *params)
    out3 = class_block_forward(x2, *params, block_b=16)
    out4 = class_block_forward(x2, *params, block_b=16, force_two_stage=True)
    jax.block_until_ready((out3, out4))
    assert out3.shape == (B2, CLASS_NUM) and out4.shape == (B2, CLASS_NUM)
    assert bool(jnp.allclose(out3, ref2, atol=5e-3, rtol=5e-2)), \
        float(jnp.max(jnp.abs(out3 - ref2)))
    assert bool(jnp.allclose(out4, ref2, atol=5e-3, rtol=5e-2)), \
        float(jnp.max(jnp.abs(out4 - ref2)))

    print("KERNEL_OK")
</pallas_src>

<mosaic_0001>
module attributes {stable_mosaic.version = 11 : i64} {
  func.func @_fused_kernel(%arg0: i32, %arg1: i32, %arg2: memref<16x256xbf16, #tpu.memory_space<vmem>>, %arg3: memref<256x128xbf16, #tpu.memory_space<vmem>>, %arg4: memref<1x128xf32, #tpu.memory_space<vmem>>, %arg5: memref<1x128xf32, #tpu.memory_space<vmem>>, %arg6: memref<128x256xbf16, #tpu.memory_space<vmem>>, %arg7: memref<1x256xf32, #tpu.memory_space<vmem>>, %arg8: memref<16x256xf32, #tpu.memory_space<vmem>>, %arg9: memref<1x16x128xbf16, #tpu.memory_space<vmem>>, %arg10: memref<1x128xf32, #tpu.memory_space<vmem>>, %arg11: memref<1x128xf32, #tpu.memory_space<vmem>>, %arg12: memref<1x128xf32, #tpu.memory_space<vmem>>, %arg13: memref<1x128xf32, #tpu.memory_space<vmem>>) attributes {dimension_semantics = [#tpu.dimension_semantics<arbitrary>, #tpu.dimension_semantics<arbitrary>], iteration_bounds = array<i64: 2, 1>, scalar_prefetch = 0 : i64, scratch_operands = 5 : i64, tpu.core_type = #tpu.core_type<tc>, window_params = [{transform_indices = @transform_0, window_bounds = array<i64: 16, 256>}, {pipeline_mode = #tpu.pipeline_mode<synchronous>, transform_indices = @transform_1, window_bounds = array<i64: 256, 128>}, {pipeline_mode = #tpu.pipeline_mode<synchronous>, transform_indices = @transform_2, window_bounds = array<i64: 1, 128>}, {pipeline_mode = #tpu.pipeline_mode<synchronous>, transform_indices = @transform_3, window_bounds = array<i64: 1, 128>}, {pipeline_mode = #tpu.pipeline_mode<synchronous>, transform_indices = @transform_4, window_bounds = array<i64: 128, 256>}, {pipeline_mode = #tpu.pipeline_mode<synchronous>, transform_indices = @transform_5, window_bounds = array<i64: 1, 256>}, {transform_indices = @transform_6, window_bounds = array<i64: 16, 256>}]} {
    %c0_i32 = arith.constant 0 : i32
    %0 = arith.cmpi eq, %arg0, %c0_i32 : i32
    %c0_i32_0 = arith.constant 0 : i32
    %1 = arith.cmpi eq, %arg1, %c0_i32_0 : i32
    %2 = arith.andi %0, %1 : i1
    %3 = arith.extui %2 : i1 to i32
    %c0_i32_1 = arith.constant 0 : i32
    %4 = arith.cmpi ne, %3, %c0_i32_1 : i32
    scf.if %4 {
      %cst = arith.constant 0.000000e+00 : f32
      %16 = vector.broadcast %cst : f32 to vector<1x128xf32>
      %c0 = arith.constant 0 : index
      %c0_8 = arith.constant 0 : index
      %17 = vector.load %arg10[%c0, %c0_8] : memref<1x128xf32, #tpu.memory_space<vmem>>, vector<1x128xf32>
      tpu.vector_store %arg10[%c0, %c0_8], %16 {strides = array<i32>} : memref<1x128xf32, #tpu.memory_space<vmem>>, vector<1x128xf32>,
      %cst_9 = arith.constant 0.000000e+00 : f32
      %18 = vector.broadcast %cst_9 : f32 to vector<1x128xf32>
      %c0_10 = arith.constant 0 : index
      %c0_11 = arith.constant 0 : index
      %19 = vector.load %arg11[%c0_10, %c0_11] : memref<1x128xf32, #tpu.memory_space<vmem>>, vector<1x128xf32>
      tpu.vector_store %arg11[%c0_10, %c0_11], %18 {strides = array<i32>} : memref<1x128xf32, #tpu.memory_space<vmem>>, vector<1x128xf32>,
    } else {
    }
    %c0_i32_2 = arith.constant 0 : i32
    %5 = arith.cmpi eq, %arg0, %c0_i32_2 : i32
    %6 = arith.extui %5 : i1 to i32
    %c0_i32_3 = arith.constant 0 : i32
    %7 = arith.cmpi ne, %6, %c0_i32_3 : i32
    scf.if %7 {
      %c0 = arith.constant 0 : index
      %c0_8 = arith.constant 0 : index
      %16 = vector.load %arg2[%c0, %c0_8] : memref<16x256xbf16, #tpu.memory_space<vmem>>, vector<16x256xbf16>
      %c0_9 = arith.constant 0 : index
      %c0_10 = arith.constant 0 : index
      %17 = vector.load %arg3[%c0_9, %c0_10] : memref<256x128xbf16, #tpu.memory_space<vmem>>, vector<256x128xbf16>
      %cst = arith.constant dense<0.000000e+00> : vector<16x128xf32>
      %18 = tpu.matmul %16, %17, %cst {dimension_numbers = #tpu.dot_dimension_numbers<[1], [0], [0], [1], [0, 0, 1, 1], [], []>} : vector<16x256xbf16>, vector<256x128xbf16>, vector<16x128xf32> -> vector<16x128xf32>
      %19 = arith.truncf %18 : vector<16x128xf32> to vector<16x128xbf16>
      %20 = arith.index_cast %arg1 : i32 to index
      %c0_11 = arith.constant 0 : index
      %c0_12 = arith.constant 0 : index
      %21 = vector.load %arg9[%20, %c0_11, %c0_12] : memref<1x16x128xbf16, #tpu.memory_space<vmem>>, vector<1x16x128xbf16>
      %22 = vector.shape_cast %21 : vector<1x16x128xbf16> to vector<16x128xbf16>
      %23 = vector.shape_cast %19 : vector<16x128xbf16> to vector<1x16x128xbf16>
      tpu.vector_store %arg9[%20, %c0_11, %c0_12], %23 {strides = array<i32>} : memref<1x16x128xbf16, #tpu.memory_space<vmem>>, vector<1x16x128xbf16>,
      %c0_13 = arith.constant 0 : index
      %c0_14 = arith.constant 0 : index
      %24 = vector.load %arg10[%c0_13, %c0_14] : memref<1x128xf32, #tpu.memory_space<vmem>>, vector<1x128xf32>
      %cst_15 = arith.constant dense<0.000000e+00> : vector<128xf32>
      %25 = vector.multi_reduction <add>, %18, %cst_15 [0] : vector<16x128xf32> to vector<128xf32>
      %26 = vector.shape_cast %25 : vector<128xf32> to vector<1x128xf32>
      %27 = arith.addf %24, %26 : vector<1x128xf32>
      %c0_16 = arith.constant 0 : index
      %c0_17 = arith.constant 0 : index
      %28 = vector.load %arg10[%c0_16, %c0_17] : memref<1x128xf32, #tpu.memory_space<vmem>>, vector<1x128xf32>
      tpu.vector_store %arg10[%c0_16, %c0_17], %27 {strides = array<i32>} : memref<1x128xf32, #tpu.memory_space<vmem>>, vector<1x128xf32>,
      %c0_18 = arith.constant 0 : index
      %c0_19 = arith.constant 0 : index
      %29 = vector.load %arg11[%c0_18, %c0_19] : memref<1x128xf32, #tpu.memory_space<vmem>>, vector<1x128xf32>
      %30 = arith.mulf %18, %18 : vector<16x128xf32>
      %cst_20 = arith.constant dense<0.000000e+00> : vector<128xf32>
      %31 = vector.multi_reduction <add>, %30, %cst_20 [0] : vector<16x128xf32> to vector<128xf32>
      %32 = vector.shape_cast %31 : vector<128xf32> to vector<1x128xf32>
      %33 = arith.addf %29, %32 : vector<1x128xf32>
      %c0_21 = arith.constant 0 : index
      %c0_22 = arith.constant 0 : index
      %34 = vector.load %arg11[%c0_21, %c0_22] : memref<1x128xf32, #tpu.memory_space<vmem>>, vector<1x128xf32>
      tpu.vector_store %arg11[%c0_21, %c0_22], %33 {strides = array<i32>} : memref<1x128xf32, #tpu.memory_space<vmem>>, vector<1x128xf32>,
    } else {
    }
    %c1_i32 = arith.constant 1 : i32
    %8 = arith.cmpi eq, %arg0, %c1_i32 : i32
    %c0_i32_4 = arith.constant 0 : i32
    %9 = arith.cmpi eq, %arg1, %c0_i32_4 : i32
    %10 = arith.andi %8, %9 : i1
    %11 = arith.extui %10 : i1 to i32
    %c0_i32_5 = arith.constant 0 : i32
    %12 = arith.cmpi ne, %11, %c0_i32_5 : i32
    scf.if %12 {
      %c0 = arith.constant 0 : index
      %c0_8 = arith.constant 0 : index
      %16 = vector.load %arg10[%c0, %c0_8] : memref<1x128xf32, #tpu.memory_space<vmem>>, vector<1x128xf32>
      %cst = arith.constant 1.250000e-01 : f32
      %17 = vector.broadcast %cst : f32 to vector<1x128xf32>
      %18 = arith.mulf %16, %17 : vector<1x128xf32>
      %c0_9 = arith.constant 0 : index
      %c0_10 = arith.constant 0 : index
      %19 = vector.load %arg11[%c0_9, %c0_10] : memref<1x128xf32, #tpu.memory_space<vmem>>, vector<1x128xf32>
      %cst_11 = arith.constant 1.250000e-01 : f32
      %20 = vector.broadcast %cst_11 : f32 to vector<1x128xf32>
      %21 = arith.mulf %19, %20 : vector<1x128xf32>
      %22 = arith.mulf %18, %18 : vector<1x128xf32>
      %23 = arith.subf %21, %22 : vector<1x128xf32>
      %cst_12 = arith.constant 0.000000e+00 : f32
      %24 = vector.broadcast %cst_12 : f32 to vector<1x128xf32>
      %25 = arith.maximumf %23, %24 : vector<1x128xf32>
      %c0_13 = arith.constant 0 : index
      %c0_14 = arith.constant 0 : index
      %26 = vector.load %arg4[%c0_13, %c0_14] : memref<1x128xf32, #tpu.memory_space<vmem>>, vector<1x128xf32>
      %cst_15 = arith.constant 9.99999974E-6 : f32
      %27 = vector.broadcast %cst_15 : f32 to vector<1x128xf32>
      %28 = arith.addf %25, %27 : vector<1x128xf32>
      %29 = math.rsqrt %28 : vector<1x128xf32>
      %30 = arith.mulf %26, %29 : vector<1x128xf32>
      %c0_16 = arith.constant 0 : index
      %c0_17 = arith.constant 0 : index
      %31 = vector.load %arg12[%c0_16, %c0_17] : memref<1x128xf32, #tpu.memory_space<vmem>>, vector<1x128xf32>
      tpu.vector_store %arg12[%c0_16, %c0_17], %30 {strides = array<i32>} : memref<1x128xf32, #tpu.memory_space<vmem>>, vector<1x128xf32>,
      %c0_18 = arith.constant 0 : index
      %c0_19 = arith.constant 0 : index
      %32 = vector.load %arg5[%c0_18, %c0_19] : memref<1x128xf32, #tpu.memory_space<vmem>>, vector<1x128xf32>
      %33 = arith.mulf %18, %30 : vector<1x128xf32>
      %34 = arith.subf %32, %33 : vector<1x128xf32>
      %c0_20 = arith.constant 0 : index
      %c0_21 = arith.constant 0 : index
      %35 = vector.load %arg13[%c0_20, %c0_21] : memref<1x128xf32, #tpu.memory_space<vmem>>, vector<1x128xf32>
      tpu.vector_store %arg13[%c0_20, %c0_21], %34 {strides = array<i32>} : memref<1x128xf32, #tpu.memory_space<vmem>>, vector<1x128xf32>,
    } else {
    }
    %c1_i32_6 = arith.constant 1 : i32
    %13 = arith.cmpi eq, %arg0, %c1_i32_6 : i32
    %14 = arith.extui %13 : i1 to i32
    %c0_i32_7 = arith.constant 0 : i32
    %15 = arith.cmpi ne, %14, %c0_i32_7 : i32
    scf.if %15 {
      %16 = arith.index_cast %arg1 : i32 to index
      %c0 = arith.constant 0 : index
      %c0_8 = arith.constant 0 : index
      %17 = vector.load %arg9[%16, %c0, %c0_8] : memref<1x16x128xbf16, #tpu.memory_space<vmem>>, vector<1x16x128xbf16>
      %18 = vector.shape_cast %17 : vector<1x16x128xbf16> to vector<16x128xbf16>
      %19 = arith.extf %18 : vector<16x128xbf16> to vector<16x128xf32>
      %c0_9 = arith.constant 0 : index
      %c0_10 = arith.constant 0 : index
      %20 = vector.load %arg12[%c0_9, %c0_10] : memref<1x128xf32, #tpu.memory_space<vmem>>, vector<1x128xf32>
      %21 = vector.broadcast %20 : vector<1x128xf32> to vector<16x128xf32>
      %22 = arith.mulf %19, %21 : vector<16x128xf32>
      %c0_11 = arith.constant 0 : index
      %c0_12 = arith.constant 0 : index
      %23 = vector.load %arg13[%c0_11, %c0_12] : memref<1x128xf32, #tpu.memory_space<vmem>>, vector<1x128xf32>
      %24 = vector.broadcast %23 : vector<1x128xf32> to vector<16x128xf32>
      %25 = arith.addf %22, %24 : vector<16x128xf32>
      %cst = arith.constant 0.000000e+00 : f32
      %26 = vector.broadcast %cst : f32 to vector<16x128xf32>
      %27 = arith.cmpf oge, %25, %26 : vector<16x128xf32>
      %cst_13 = arith.constant 1.000000e-01 : f32
      %28 = vector.broadcast %cst_13 : f32 to vector<16x128xf32>
      %29 = arith.mulf %28, %25 : vector<16x128xf32>
      %30 = arith.select %27, %25, %29 : vector<16x128xi1>, vector<16x128xf32>
      %31 = arith.truncf %30 : vector<16x128xf32> to vector<16x128xbf16>
      %c0_14 = arith.constant 0 : index
      %c0_15 = arith.constant 0 : index
      %32 = vector.load %arg6[%c0_14, %c0_15] : memref<128x256xbf16, #tpu.memory_space<vmem>>, vector<128x256xbf16>
      %cst_16 = arith.constant dense<0.000000e+00> : vector<16x256xf32>
      %33 = tpu.matmul %31, %32, %cst_16 {dimension_numbers = #tpu.dot_dimension_numbers<[1], [0], [0], [1], [0, 0, 1, 1], [], []>} : vector<16x128xbf16>, vector<128x256xbf16>, vector<16x256xf32> -> vector<16x256xf32>
      %c0_17 = arith.constant 0 : index
      %c0_18 = arith.constant 0 : index
      %34 = vector.load %arg7[%c0_17, %c0_18] : memref<1x256xf32, #tpu.memory_space<vmem>>, vector<1x256xf32>
      %35 = vector.broadcast %34 : vector<1x256xf32> to vector<16x256xf32>
      %36 = arith.addf %33, %35 : vector<16x256xf32>
      %c0_19 = arith.constant 0 : index
      %c0_20 = arith.constant 0 : index
      %37 = vector.load %arg8[%c0_19, %c0_20] : memref<16x256xf32, #tpu.memory_space<vmem>>, vector<16x256xf32>
      tpu.vector_store %arg8[%c0_19, %c0_20], %36 {strides = array<i32>} : memref<16x256xf32, #tpu.memory_space<vmem>>, vector<16x256xf32>,
    } else {
    }
    return
  }
  func.func @transform_0(%arg0: i32, %arg1: i32) -> (i32, i32) {
    %c1_i32 = arith.constant 1 : i32
    %0 = arith.subi %c1_i32, %arg0 : i32
    %1 = arith.muli %arg1, %0 : i32
    %c0_i32 = arith.constant 0 : i32
    %c0_i32_0 = arith.constant 0 : i32
    return %1, %c0_i32 : i32, i32
  }
  func.func @transform_1(%arg0: i32, %arg1: i32) -> (i32, i32) {
    %c0_i32 = arith.constant 0 : i32
    %c0_i32_0 = arith.constant 0 : i32
    %c0_i32_1 = arith.constant 0 : i32
    return %c0_i32, %c0_i32_0 : i32, i32
  }
  func.func @transform_2(%arg0: i32, %arg1: i32) -> (i32, i32) {
    %c0_i32 = arith.constant 0 : i32
    %c0_i32_0 = arith.constant 0 : i32
    %c0_i32_1 = arith.constant 0 : i32
    return %c0_i32, %c0_i32_0 : i32, i32
  }
  func.func @transform_3(%arg0: i32, %arg1: i32) -> (i32, i32) {
    %c0_i32 = arith.constant 0 : i32
    %c0_i32_0 = arith.constant 0 : i32
    %c0_i32_1 = arith.constant 0 : i32
    return %c0_i32, %c0_i32_0 : i32, i32
  }
  func.func @transform_4(%arg0: i32, %arg1: i32) -> (i32, i32) {
    %c0_i32 = arith.constant 0 : i32
    %c0_i32_0 = arith.constant 0 : i32
    %c0_i32_1 = arith.constant 0 : i32
    return %c0_i32, %c0_i32_0 : i32, i32
  }
  func.func @transform_5(%arg0: i32, %arg1: i32) -> (i32, i32) {
    %c0_i32 = arith.constant 0 : i32
    %c0_i32_0 = arith.constant 0 : i32
    %c0_i32_1 = arith.constant 0 : i32
    return %c0_i32, %c0_i32_0 : i32, i32
  }
  func.func @transform_6(%arg0: i32, %arg1: i32) -> (i32, i32) {
    %0 = arith.muli %arg1, %arg0 : i32
    %c0_i32 = arith.constant 0 : i32
    %c0_i32_0 = arith.constant 0 : i32
    return %0, %c0_i32 : i32, i32
  }
}

</mosaic_0001>

<bundles_post_ra>
// kernel: tpu_custom_call.1
= control target key start
LH: loop header
LB: loop body
LE: loop exit
PB: predicated region body
PF: predicated region fallthrough
CT: control target
= control target key end

     0   :  { %11 = vsyncpa [#allocation8], 0  ;;  %s1438_s0 = inlined_call_operand.hbm [shape: bf16[16,256], index: 0, kind: input, shape index: {}]   ;;  %s1439_s1 = inlined_call_operand.hbm [shape: bf16[256,128], index: 1, kind: input, shape index: {}]   ;;  %s1440_s2 = inlined_call_operand.vmem [shape: f32[1,128], index: 2, kind: input, shape index: {}]   ;;  %s1441_s3 = inlined_call_operand.vmem [shape: f32[1,128], index: 3, kind: input, shape index: {}]   ;;  %s1442_s4 = inlined_call_operand.hbm [shape: bf16[128,256], index: 4, kind: input, shape index: {}]   ;;  %s1443_s5 = inlined_call_operand.vmem [shape: f32[1,256], index: 5, kind: input, shape index: {}]   ;;  %s1444_s6 = inlined_call_operand.hbm [shape: f32[16,256], index: 6, kind: output, shape index: {}]  }
   0x1   :  { %13 = vsyncpa [#allocation8 + $0x1], 0 }
   0x2   :  { %14 = vsyncpa [#allocation11], 0 }
   0x3   :  { %15 = vsyncpa [#allocation9], 0 }
   0x4   :  { %17 = vsyncpa [#allocation9 + $0x1], 0  ;;  %s1267_s21 = smov 0   ;;  %s1269_s22 = smov 0  }
   0x5   :  { %s1271_s23 = smov 0  }
   0x6 LB: > { %s873_s24 = sadd.s32 4294967295, %s1218_s23   ;;  %s874_s25 = sadd.s32 4294967294, %s1218_s23   ;;  %s1218_s23 = sphi %s1271_s23, %s23_s23   ;;  %s1214_s22 = sphi %s1269_s22, %s1457_s22   ;;  %s1210_s21 = sphi %s1267_s21, %s1456_s21  }
   0x7   : > { %s35_s26 = sadd.s32 1, %s1214_s22  ;;  %p875_p0 = scmp.ge.s32.totalorder %s1218_s23, 1 }
   0x8   : > { %p37_p1 = scmp.ge.s32.totalorder %s35_s26, 2  ;;  %p203_p2 = scmp.lt.s32.totalorder %s1218_s23, 3 }
   0x9   : > { %p1289_p3 = scmp.eq.s32.totalorder %s873_s24, 0  ;;  %s1220_s29 = smov [#allocation10]  }
   0xa   : > { %s1459_s26 = smov (%p37_p1, %s35_s26), 0  ;;  %p1295_p4 = pnand %p875_p0, %p203_p2 }
   0xb   : > { %s1448_s27 = scalar_select %p1289_p3, 1, 0 }
   0xc   : > { %s1449_s28 = scalar_select %p1295_p4, 1, 0 }
   0xd   : > { %s215_s30 = sshll.u32 %s1220_s29, 4  ;;  %p968_p5 = pneg %p1295_p4  ;;  %s216_s30 = int_to_ptr.vmem [resolvable:$true] %s215_s30 }
   0xe   : > { %s1221_s8 = smov [#allocation12]   ;;  %s1074_s12 = scalar_lea.hbm %s1439_s1, 2048 }
   0xf   : > { %p1304_p7 = pnand %p1289_p3, %p968_p5  ;;  %s234_s9 = sshll.u32 %s1221_s8, 4  ;;  %s235_s9 = int_to_ptr.vmem [resolvable:$true] %s234_s9 }
  0x10   : > { %p1075_p8 = scmp.ne.s32.totalorder %s1439_s1, %s1074_s12  ;;  %p1081_p12 = scmp.lt.u32.totalorder %s1074_s12, %s1439_s1 }
  0x11   : > { %p1076_p9 = pneg %p1304_p7 }
  0x13   : > { %p1077_p10 = pnand %p1076_p9, %p1075_p8 }
  0x15   : > { %p1078_p11 = pneg %p1077_p10 }
  0x17   : > { %p1083_p13 = pnand %p1081_p12, %p1078_p11 }
  0x19   : > { %1086 = shalt.err (!%p1083_p13)
}
  0x1a   : > { %s1087_s17 = scalar_lea.vmem %s216_s30, 2048  ;;  %p1095_p5 = scmp.lt.s32.totalorder %s216_s30, %s216_s30 }
  0x1b   : > { %p1088_p0 = scmp.ne.s32.totalorder %s216_s30, %s1087_s17  ;;  %p1096_p6 = scmp.lt.s32.totalorder %s1087_s17, %s1087_s17 }
  0x1d   : > { %p1090_p1 = pnand %p1088_p0, %p1076_p9  ;;  %p1097_p3 = por %p1096_p6, %p1095_p5 }
  0x1f   : > { %p1091_p2 = pneg %p1090_p1 }
  0x21   : > { %p1098_p4 = pnand %p1097_p3, %p1091_p2 }
  0x23   : > { %1101 = shalt.err (!%p1098_p4)
}
  0x24   : > { %s1222_s18 = smov 64   ;;  %s1223_s19 = smov 4  }
  0x25   : > { %971 = dma.hbm_to_vmem [thread:$0]  (!%p1304_p7), %s1439_s1, 2048, %s216_s30, [#allocation11], %s1222_s18, %s1222_s18, %s1223_s19  }
  0x26   : > { %s1102_s11 = scalar_lea.hbm %s1442_s4, 2048 }
  0x27   : > { %p1103_p6 = scmp.ne.s32.totalorder %s1442_s4, %s1102_s11  ;;  %p1109_p8 = scmp.lt.u32.totalorder %s1102_s11, %s1442_s4 }
  0x29   : > { %p1105_p3 = pnand %p1103_p6, %p1076_p9 }
  0x2b   : > { %p1106_p4 = pneg %p1105_p3 }
  0x2d   : > { %p1111_p10 = pnand %p1109_p8, %p1106_p4 }
  0x2f   : > { %1114 = shalt.err (!%p1111_p10)
}
  0x30   : > { %s1115_s30 = scalar_lea.vmem %s235_s9, 2048  ;;  %p1123_p0 = scmp.lt.s32.totalorder %s235_s9, %s235_s9 }
  0x31   : > { %p1116_p11 = scmp.ne.s32.totalorder %s235_s9, %s1115_s30  ;;  %p1124_p1 = scmp.lt.s32.totalorder %s1115_s30, %s1115_s30 }
  0x33   : > { %p1118_p12 = pnand %p1116_p11, %p1076_p9  ;;  %p1125_p2 = por %p1124_p1, %p1123_p0 }
  0x35   : > { %p1119_p13 = pneg %p1118_p12 }
  0x37   : > { %p1126_p5 = pnand %p1125_p2, %p1119_p13 }
  0x39   : > { %1129 = shalt.err (!%p1126_p5)
}
  0x3a   : > { %s1224_s16 = smov 128   ;;  %s1225_s17 = smov 8  }
  0x3b   : > { %974 = dma.hbm_to_vmem [thread:$0]  (!%p1304_p7), %s1442_s4, 2048, %s235_s9, [#allocation11], %s1224_s16, %s1224_s16, %s1225_s17  }
  0x3c   : > { %p985_p9 = scmp.lt.s32.totalorder %s1218_s23, 2  ;;  %p986_p6 = scmp.eq.s32.totalorder %s1218_s23, 0 }
  0x3d   : > { %s1226_s20 = smov [#allocation7]   ;;  %s1130_s7 = scalar_lea.hbm %s1438_s0, 256 }
  0x3e   : > { %s265_s29 = sshll.u32 %s1226_s20, 4  ;;  %p1355_p3 = pnand %p986_p6, %p985_p9  ;;  %s266_s29 = int_to_ptr.vmem [resolvable:$true] %s265_s29 }
  0x3f   : > { %p1131_p4 = scmp.ne.s32.totalorder %s1438_s0, %s1130_s7  ;;  %p1137_p11 = scmp.lt.u32.totalorder %s1130_s7, %s1438_s0 }
  0x40   : > { %p1132_p7 = pneg %p1355_p3 }
  0x42   : > { %p1133_p8 = pnand %p1132_p7, %p1131_p4 }
  0x44   : > { %p1134_p10 = pneg %p1133_p8 }
  0x46   : > { %p1139_p12 = pnand %p1137_p11, %p1134_p10 }
  0x48   : > { %1142 = shalt.err (!%p1139_p12)
}
  0x49   : > { %s1143_s15 = scalar_lea.vmem %s266_s29, 256  ;;  %s1150_s30 = scalar_lea.vmem %s266_s29, 512 }
  0x4a   : > { %p1144_p13 = scmp.ne.s32.totalorder %s266_s29, %s1143_s15  ;;  %p1151_p2 = scmp.lt.s32.totalorder %s266_s29, %s266_s29 }
  0x4b   : > { %p1152_p5 = scmp.lt.s32.totalorder %s1150_s30, %s1143_s15 }
  0x4c   : > { %p1146_p0 = pnand %p1144_p13, %p1132_p7 }
  0x4d   : > { %p1153_p9 = por %p1152_p5, %p1151_p2 }
  0x4e   : > { %p1147_p1 = pneg %p1146_p0 }
  0x50   : > { %p1154_p6 = pnand %p1153_p9, %p1147_p1 }
  0x52   : > { %1157 = shalt.err (!%p1154_p6)
}
  0x53   : > { %978 = dma.hbm_to_vmem [thread:$0]  (!%p1355_p3), %s1438_s0, 256, %s266_s29, [#allocation8], %s1224_s16, %s1224_s16, %s1225_s17  }
  0x54   : > { %p1452_p4 = scmp.ne.s32.totalorder %s1449_s28, 0 }
  0x55   : > { %p1453_p7 = scmp.ne.s32.totalorder (!%p1452_p4), %s1448_s27, 0 }
  0x56   : > { %277 = sbr.rel (%p1452_p4) target bundleno = 684 (0x2ac), region = 44 }
  0x5d   : > { %1197 = dma.done.wait (%p1453_p7), [#allocation8], 256  }
  0x5e   : > { %1199 = vsyncadd (%p1453_p7), [#allocation8], 4294967040 }
  0x5f   : > { %1201 = dma.done.wait (%p1453_p7), [#allocation11], 4096  }
  0x60   : > { %1203 = vsyncadd (%p1453_p7), [#allocation11], 4294963200  ;;  %p326_p8 = scmp.eq.s32.totalorder %s1210_s21, 0 }
  0x61   : > { %v1227_v0 = vmov (%p326_p8), 0.0  }
  0x62   : > { %331 = sbr.rel (!%p326_p8) target bundleno = 105 (0x69), region = 60  ;;  %332 = vst [vmem:[#allocation3] sm:$0x1] (%p326_p8), %v1227_v0  ;;  %333 = vst [vmem:[#allocation4] sm:$0x1] (%p326_p8), %v1227_v0 }
  0x69 PF: > { %p885_p3 = scmp.ne.s32.totalorder %s1210_s21, 0 }
  0x6a   : > { %v1029_v1 = vld [vmem:[#allocation10 + $0x40] sm:$0xff] (!%p885_p3)   ;;  %v1031_v3 = vld [vmem:[#allocation10 + $0x48] sm:$0xff] (!%p885_p3)   ;;  %v1033_v5 = vld [vmem:[#allocation10 + $0x50] sm:$0xff] (!%p885_p3)  }
  0x6b   : > { %336 = sbr.rel (%p885_p3) target bundleno = 375 (0x177), region = 64  ;;  %v1030_v2 = vld [vmem:[#allocation10] sm:$0xff] (!%p885_p3)   ;;  %930 = vmatprep.subr.bf16.mxu0 (!%p885_p3), %v1029_v1  ;;  %v1032_v4 = vld [vmem:[#allocation10 + $0x8] sm:$0xff] (!%p885_p3)   ;;  %v1034_v6 = vld [vmem:[#allocation10 + $0x10] sm:$0xff] (!%p885_p3)  }
  0x6c   : > { %931 = vmatpush3.bf16.msra.mxu0 (!%p885_p3), %v1030_v2  ;;  %v1035_v7 = vld [vmem:[#allocation10 + $0x58] sm:$0xff] (!%p885_p3)   ;;  %v1037_v9 = vld [vmem:[#allocation10 + $0x60] sm:$0xff] (!%p885_p3)   ;;  %v1039_v11 = vld [vmem:[#allocation10 + $0x68] sm:$0xff] (!%p885_p3)  }
  0x6d   : > { %932 = vmatprep.subr.bf16.mxu0 (!%p885_p3), %v1031_v3  ;;  %v1036_v8 = vld [vmem:[#allocation10 + $0x18] sm:$0xff] (!%p885_p3)   ;;  %v1038_v10 = vld [vmem:[#allocation10 + $0x20] sm:$0xff] (!%p885_p3)   ;;  %v1040_v13 = vld [vmem:[#allocation10 + $0x28] sm:$0xff] (!%p885_p3)  }
  0x6e   : > { %v1047_v12 = vld [vmem:[#allocation7 + $0x4] ss:$8 sps:$4 sm:$0xff] (!%p885_p3)   ;;  %v1041_v14 = vld [vmem:[#allocation10 + $0x70] sm:$0xff] (!%p885_p3)   ;;  %v1043_v16 = vld [vmem:[#allocation10 + $0x78] sm:$0xff] (!%p885_p3)  }
  0x6f   : > { %509 = vmatprep.mubr.bf16.mxu0 (!%p885_p3), %v1047_v12  ;;  %v1042_v15 = vld [vmem:[#allocation10 + $0x30] sm:$0xff] (!%p885_p3)   ;;  %v1044_v17 = vld [vmem:[#allocation10 + $0x38] sm:$0xff] (!%p885_p3)   ;;  %v1045_v18 = vld [vmem:[#allocation7] ss:$8 sps:$4 sm:$0xff] (!%p885_p3)  }
  0x70   : > { %933 = vmatpush3.bf16.msra.mxu0 (!%p885_p3), %v1032_v4  ;;  %v522_v39 = vld [vmem:[#allocation3] sm:$0x1] (!%p885_p3)  ;;  %v532_v42 = vld [vmem:[#allocation4] sm:$0x1] (!%p885_p3) }
  0x71   : > { %934 = vmatprep.subr.bf16.mxu0 (!%p885_p3), %v1033_v5 }
  0x74   : > { %935 = vmatpush3.bf16.msra.mxu0 %v1034_v6 }
  0x75   : > { %936 = vmatprep.subr.bf16.mxu0 %v1035_v7 }
  0x78   : > { %937 = vmatpush3.bf16.msra.mxu0 %v1036_v8 }
  0x79   : > { %938 = vmatprep.subr.bf16.mxu0 %v1037_v9 }
  0x7c   : > { %939 = vmatpush3.bf16.msra.mxu0 %v1038_v10 }
  0x7d   : > { %940 = vmatprep.subr.bf16.mxu0 %v1039_v11 }
  0x80   : > { %941 = vmatpush3.bf16.msra.mxu0 %v1040_v13 }
  0x81   : > { %942 = vmatprep.subr.bf16.mxu0 %v1041_v14 }
  0x84   : > { %943 = vmatpush3.bf16.msra.mxu0 %v1042_v15 }
  0x85   : > { %944 = vmatprep.subr.bf16.mxu0 %v1043_v16 }
  0x88   : > { %945 = vmatpush3.bf16.msra.mxu0 %v1044_v17 }
  0x8b   : > { %510 = vmatmul.mubr.bf16.vlgmr.msra.gmra.mrb[0].mxu0 %v1045_v18 }
 0x15e   : > { %v946_v19 = vpop.f32.mrb[0].mxu0 }
 0x15f   : > { %v947_v20 = vpop.f32.mrb[1].mxu0 }
 0x160   : > { %v948_v21 = vadd.f32 %v947_v20, %v946_v19  ;;  %v949_v22 = vpop.f32.mrb[2].mxu0 }
 0x161   : > { %v950_v23 = vpop.f32.mrb[3].mxu0 }
 0x162   : > { %v951_v24 = vadd.f32 %v950_v23, %v949_v22  ;;  %v533_v25 = vmul.f32 %v948_v21, %v948_v21 }
 0x164   : > { %v518_v26 = vpack.c.bf16 %v951_v24, %v948_v21  ;;  %v523_v27 = vadd.f32 %v951_v24, %v948_v21  ;;  %v534_v28 = vmul.f32 %v951_v24, %v951_v24 }
 0x166   : > { %521 = vst [vmem:[#allocation2] sm:$0xff] %v518_v26  ;;  %v524_v29 = vrot.slane %v523_v27, 4  ;;  %v535_v30 = vadd.f32 %v534_v28, %v533_v25 }
 0x168   : > { %v525_v31 = vadd.f32 %v524_v29, %v523_v27  ;;  %v536_v32 = vrot.slane %v535_v30, 4 }
 0x16a   : > { %v526_v33 = vrot.slane %v525_v31, 2  ;;  %v537_v34 = vadd.f32 %v536_v32, %v535_v30 }
 0x16c   : > { %v527_v35 = vadd.f32 %v526_v33, %v525_v31  ;;  %v538_v36 = vrot.slane %v537_v34, 2 }
 0x16e   : > { %v528_v37 = vrot.slane %v527_v35, 1  ;;  %v539_v38 = vadd.f32 %v538_v36, %v537_v34 }
 0x170   : > { %v529_v40 = vadd.f32 %v528_v37, %v527_v35  ;;  %v540_v41 = vrot.slane %v539_v38, 1 }
 0x172   : > { %v530_v43 = vadd.f32 %v529_v40, %v522_v39  ;;  %v541_v44 = vadd.f32 %v540_v41, %v539_v38 }
 0x174   : > { %531 = vst [vmem:[#allocation3] sm:$0x1] %v530_v43  ;;  %v542_v45 = vadd.f32 %v541_v44, %v532_v42 }
 0x176   : > { %543 = vst [vmem:[#allocation4] sm:$0x1] %v542_v45 }
 0x177 PF: > { %p544_p10 = scmp.eq.s32.totalorder %s1210_s21, 1 }
 0x178   : > { %v556_v54 = vld [vmem:[%s1440_s2] sm:$0x1] (%p544_p10) }
 0x179   : > { %548 = sbr.rel (!%p544_p10) target bundleno = 408 (0x198), region = 68  ;;  %v561_v57 = vld [vmem:[%s1441_s3] sm:$0x1] (%p544_p10) }
 0x17b   : > { %v549_v46 = vld [vmem:[#allocation3] sm:$0x1] (%p544_p10) }
 0x17c   : > { %v550_v48 = vmul.f32 (%p544_p10), 0.125, %v549_v46 }
 0x17d   : > { %v551_v47 = vld [vmem:[#allocation4] sm:$0x1] (%p544_p10) }
 0x17e   : > { %v552_v49 = vmul.f32 (%p544_p10), 0.125, %v551_v47  ;;  %v553_v50 = vmul.f32 (%p544_p10), %v550_v48, %v550_v48 }
 0x180   : > { %v554_v51 = vsub.f32 %v552_v49, %v553_v50 }
 0x182   : > { %v555_v52 = vmax.f32 %v554_v51, 0.0 }
 0x184   : > { %v557_v53 = vadd.f32 1e-05, %v555_v52 }
 0x186   : > { %1048 = vrsqrt.f32 %v557_v53 }
 0x190   : > { %v1049_v55 = vpop.eup %1048 }
 0x191   : > { %v559_v56 = vmul.f32 %v1049_v55, %v556_v54 }
 0x193   : > { %560 = vst [vmem:[#allocation5] sm:$0x1] %v559_v56  ;;  %v562_v58 = vmul.f32 %v559_v56, %v550_v48 }
 0x195   : > { %v563_v59 = vsub.f32 %v561_v57, %v562_v58 }
 0x197   : > { %564 = vst [vmem:[#allocation6] sm:$0x1] %v563_v59 }
 0x198 PF: > { %p905_p11 = scmp.ne.s32.totalorder %s1210_s21, 1 }
 0x199   : > { %v1050_v60 = vld [vmem:[#allocation12 + $0x4] ss:$8 sps:$4 sm:$0xff] (!%p905_p11)   ;;  %v1052_v61 = vld [vmem:[#allocation12] ss:$8 sps:$4 sm:$0xff] (!%p905_p11)   ;;  %v1228_v62 = vmov (!%p905_p11), 0   ;;  %v570_v4 = vld [vmem:[#allocation2] sm:$0xff] (!%p905_p11)  ;;  %v616_v27 = vlaneseq (!%p905_p11) }
 0x19a   : > { %567 = sbr.rel (%p905_p11) target bundleno = 660 (0x294), region = 72  ;;  %738 = vmatprep.mubr.bf16.mxu0 (!%p905_p11), %v1228_v62  ;;  %706 = vmatprep.subr.bf16.mxu0 (!%p905_p11), %v1050_v60  ;;  %v1053_v63 = vld [vmem:[#allocation12 + $0x14] ss:$8 sps:$4 sm:$0xff] (!%p905_p11)   ;;  %v1055_v0 = vld [vmem:[#allocation12 + $0x10] ss:$8 sps:$4 sm:$0xff] (!%p905_p11)   ;;  %v571_v6 = vunpack.c.l.bf16 (!%p905_p11), %v570_v4  ;;  %v572_v7 = vunpack.c.h.bf16 (!%p905_p11), %v570_v4 }
 0x19b   : > { %707 = vmatpush1.bf16.msra.mxu0 (!%p905_p11), %v1052_v61  ;;  %v1056_v1 = vld [vmem:[#allocation12 + $0x24] ss:$8 sps:$4 sm:$0xff] (!%p905_p11)   ;;  %v1058_v2 = vld [vmem:[#allocation12 + $0x20] ss:$8 sps:$4 sm:$0xff] (!%p905_p11)   ;;  %v1059_v3 = vld [vmem:[#allocation12 + $0x34] ss:$8 sps:$4 sm:$0xff] (!%p905_p11)  }
 0x19c   : > { %708 = vmatprep.subr.bf16.mxu0 (!%p905_p11), %v1053_v63  ;;  %v1061_v5 = vld [vmem:[#allocation12 + $0x30] ss:$8 sps:$4 sm:$0xff] (!%p905_p11)   ;;  %v1062_v8 = vld [vmem:[#allocation12 + $0x44] ss:$8 sps:$4 sm:$0xff] (!%p905_p11)   ;;  %v906_v9 = vld [vmem:[#allocation5] ss:$0 sm:$0xff] (!%p905_p11) }
 0x19d   : > { %v1064_v10 = vld [vmem:[#allocation12 + $0x40] ss:$8 sps:$4 sm:$0xff] (!%p905_p11)   ;;  %v580_v11 = vmul.f32 (!%p905_p11), %v906_v9, %v571_v6  ;;  %v581_v12 = vmul.f32 (!%p905_p11), %v906_v9, %v572_v7  ;;  %v1065_v13 = vld [vmem:[#allocation12 + $0x54] ss:$8 sps:$4 sm:$0xff] (!%p905_p11)   ;;  %v1067_v15 = vld [vmem:[#allocation12 + $0x50] ss:$8 sps:$4 sm:$0xff] (!%p905_p11)  }
 0x19e   : > { %v907_v14 = vld [vmem:[#allocation6] ss:$0 sm:$0xff] (!%p905_p11)  ;;  %v1068_v18 = vld [vmem:[#allocation12 + $0x64] ss:$8 sps:$4 sm:$0xff] (!%p905_p11)   ;;  %v1070_v19 = vld [vmem:[#allocation12 + $0x60] ss:$8 sps:$4 sm:$0xff] (!%p905_p11)  }
 0x19f   : > { %709 = vmatpush1.bf16.msra.mxu0 (!%p905_p11), %v1055_v0  ;;  %v589_v16 = vadd.f32 (!%p905_p11), %v907_v14, %v580_v11  ;;  %v590_v17 = vadd.f32 (!%p905_p11), %v907_v14, %v581_v12  ;;  %v1071_v22 = vld [vmem:[#allocation12 + $0x74] ss:$8 sps:$4 sm:$0xff] (!%p905_p11)   ;;  %v1073_v23 = vld [vmem:[#allocation12 + $0x70] ss:$8 sps:$4 sm:$0xff] (!%p905_p11)   ;;  %v617_v28 = vshrl.u32 (!%p905_p11), %v616_v27, 7 }
 0x1a0   : > { %710 = vmatprep.subr.bf16.mxu0 (!%p905_p11), %v1056_v1  ;;  %v614_v30 = vld [vmem:[%s1443_s5] sm:$0x3] (!%p905_p11) }
 0x1a1   : > { %v593_v20 = vmul.f32 0.1, %v589_v16  ;;  %v594_v21 = vmul.f32 0.1, %v590_v17  ;;  %vm591_vm0 = vcmp.ge.f32.partialorder %v589_v16, 0.0  ;;  %vm592_vm1 = vcmp.ge.f32.partialorder %v590_v17, 0.0 }
 0x1a2   : > { %v618_v29 = vsub.s32 0, %v617_v28  ;;  %v622_v31 = vsub.s32 1, %v617_v28 }
 0x1a3   : > { %711 = vmatpush1.bf16.msra.mxu0 %v1058_v2  ;;  %v595_v24 = vsel %vm591_vm0, %v589_v16, %v593_v20  ;;  %v596_v25 = vsel %vm592_vm1, %v590_v17, %v594_v21 }
 0x1a4   : > { %712 = vmatprep.subr.bf16.mxu0 %v1059_v3  ;;  %v597_v26 = vpack.c.bf16 %v596_v25, %v595_v24  ;;  %v619_v32 = vrot.slane %v614_v30, %v618_v29  ;;  %v623_v33 = vrot.slane %v614_v30, %v622_v31 }
 0x1a7   : > { %713 = vmatpush1.bf16.msra.mxu0 %v1061_v5 }
 0x1a8   : > { %714 = vmatprep.subr.bf16.mxu0 %v1062_v8 }
 0x1ab   : > { %715 = vmatpush1.bf16.msra.mxu0 %v1064_v10 }
 0x1ac   : > { %716 = vmatprep.subr.bf16.mxu0 %v1065_v13 }
 0x1af   : > { %717 = vmatpush1.bf16.msra.mxu0 %v1067_v15 }
 0x1b0   : > { %718 = vmatprep.subr.bf16.mxu0 %v1068_v18 }
 0x1b3   : > { %719 = vmatpush1.bf16.msra.mxu0 %v1070_v19 }
 0x1b4   : > { %720 = vmatprep.subr.bf16.mxu0 %v1071_v22 }
 0x1b7   : > { %721 = vmatpush1.bf16.msra.mxu0 %v1073_v23 }
 0x1ba   : > { %739 = vmatmul.mubr.bf16.vlgmr.msra.gmra.mrb[0].mxu0 %v597_v26 }
 0x28d   : > { %v740_v34 = vpop.f32.mrb[0].mxu0 }
 0x28e   : > { %v741_v35 = vadd.f32 %v740_v34, %v619_v32  ;;  %v742_v36 = vpop.f32.mrb[1].mxu0 }
 0x28f   : > { %v743_v37 = vadd.f32 %v742_v36, %v623_v33  ;;  %v744_v38 = vpop.f32.mrb[2].mxu0 }
 0x290   : > { %749 = vst [vmem:[#allocation13] sm:$0xff] %v741_v35  ;;  %v745_v39 = vadd.f32 %v744_v38, %v619_v32  ;;  %v746_v40 = vpop.f32.mrb[3].mxu0 }
 0x291   : > { %750 = vst [vmem:[#allocation13 + $0x8] sm:$0xff] %v743_v37  ;;  %v747_v41 = vadd.f32 %v746_v40, %v623_v33 }
 0x292   : > { %751 = vst [vmem:[#allocation13 + $0x10] sm:$0xff] %v745_v39 }
 0x293   : > { %752 = vst [vmem:[#allocation13 + $0x18] sm:$0xff] %v747_v41 }
 0x294 PF: > { %p1403_p12 = scmp.eq.s32.totalorder %s873_s24, 1  ;;  %s1229_s8 = smov [#allocation13]  }
 0x295   : > { %s769_s10 = sshll.u32 %s1229_s8, 4  ;;  %s770_s10 = int_to_ptr.vmem [resolvable:$true] %s769_s10 }
 0x296   : > { %s1158_s11 = scalar_lea.vmem %s770_s10, 512  ;;  %s1164_s7 = scalar_lea.vmem %s770_s10, 1024 }
 0x297   : > { %p1159_p13 = scmp.ne.s32.totalorder %s770_s10, %s1158_s11  ;;  %p1165_p2 = scmp.lt.s32.totalorder %s770_s10, %s770_s10 }
 0x298   : > { %p1166_p5 = scmp.lt.s32.totalorder %s1164_s7, %s1158_s11 }
 0x299   : > { %p1160_p0 = pnand %p1159_p13, %p1403_p12 }
 0x29a   : > { %p1167_p9 = por %p1166_p5, %p1165_p2 }
 0x29b   : > { %p1161_p1 = pneg %p1160_p0 }
 0x29d   : > { %p1168_p6 = pnand %p1167_p9, %p1161_p1 }
 0x29f   : > { %1171 = shalt.err (!%p1168_p6)
}
 0x2a0   : > { %s1172_s13 = scalar_lea.hbm %s1444_s6, 512 }
 0x2a1   : > { %p1173_p4 = scmp.ne.s32.totalorder %s1444_s6, %s1172_s13  ;;  %p1178_p3 = scmp.lt.u32.totalorder %s1172_s13, %s1444_s6 }
 0x2a3   : > { %p1174_p7 = pnand %p1173_p4, %p1403_p12 }
 0x2a5   : > { %p1175_p8 = pneg %p1174_p7 }
 0x2a7   : > { %p1180_p10 = pnand %p1178_p3, %p1175_p8 }
 0x2a9   : > { %1183 = shalt.err (!%p1180_p10)
}
 0x2aa   : > { %s1230_s18 = smov 256   ;;  %s1231_s19 = smov 16  }
 0x2ab   : > { %965 = dma.vmem_to_hbm [thread:$0]  (%p1403_p12), %s770_s10, 512, %s1444_s6, [#allocation9], %s1230_s18, %s1230_s18, %s1231_s19  }
 0x2ac PF: > { %p992_p11 = scmp.eq.s32.totalorder %s874_s25, 1  ;;  %p1455_p13 = scmp.ge.s32.totalorder %s1218_s23, 2 }
 0x2ae   : > { %p980_p0 = pnand %p992_p11, %p1455_p13 }
 0x2b0   : > { %1205 = dma.done.wait (!%p980_p0), [#allocation9], 512  }
 0x2b1   : > { %1207 = vsyncadd (!%p980_p0), [#allocation9], 4294966784  ;;  %s23_s23 = sadd.s32 1, %s1218_s23   ;;  %s1456_s21 = smov %s1214_s22 }
 0x2b2   : > { %p20_p1 = scmp.ge.s32.totalorder %s23_s23, 4   ;;  %s1457_s22 = smov %s1459_s26 }
 0x2b4   :  { %22 = sbr.rel (!%p20_p1) target bundleno = 6 (0x6), region = 115 }
 0x2bb   :  { %790 = vsyncpa [#allocation8], 1 }
 0x2bc   :  { %792 = vsyncpa [#allocation8 + $0x1], 1 }
 0x2bd   :  { %793 = vsyncpa [#allocation11], 1 }
 0x2be   :  { %794 = vsyncpa [#allocation9], 1 }
 0x2bf   :  { %796 = vsyncpa [#allocation9 + $0x1], 1 }

</bundles_post_ra>
